<compile_context>
chip_gen: v6e
topology: v6e:2x2x1
jax: 0.10.0
libtpu: 0.0.40
codegen_flags: <defaults>
</compile_context>

<pallas_src>
import functools

import jax
import jax.numpy as jnp
from jax.experimental import pallas as pl
from jax.experimental.pallas import tpu as pltpu


def _round_up(x, m):
    return (x + m - 1) // m * m


def _cdiv(a, b):
    return -(-a // b)


_MIN_GRID_STEPS = 8            # enough steps for double-buffered DMA overlap
_TARGET_STEP_BYTES = 2 << 20   # ~2 MiB/step blocks already saturate HBM BW


def _vmem_policy():
    """Return (tile VMEM budget, vmem_limit cap) sized per TPU generation."""
    try:
        info = pltpu.get_tpu_info()
        cap = int(getattr(info, "vmem_capacity_bytes", 128 << 20))
    except Exception:              # interpret mode / query unavailable
        cap = 128 << 20
    if cap <= (64 << 20):          # v7x: 64 MiB per TensorCore
        return 12 << 20, 28 << 20
    return 24 << 20, 48 << 20      # v5e / v6e: 128 MiB physical VMEM


def _choose_tile_t(B, T, C, Cc, itemsize, vmem_budget_bytes):
    """Lane-axis (time) tile: multiple of 128, VMEM-budgeted, small enough
    that the (B, n_t) grid has >= _MIN_GRID_STEPS pipeline steps."""
    if T <= 128:
        return T                                    # full extent — always legal
    per_col = (2 * C + Cc) * itemsize               # x + out + c bytes per lane col
    # Hard cap: double-buffered x/c/out blocks must fit the VMEM budget.
    budget_cap = max(128, (vmem_budget_bytes // (2 * per_col)) // 128 * 128)
    if B >= _MIN_GRID_STEPS:
        # Batch axis alone pipelines well: one big contiguous slab per step
        # (fewest DMA descriptors — matters most on v5e's DMA engines).
        size_cap = budget_cap
    else:
        # Keep per-step traffic ~2 MiB and give T enough steps that
        # B * n_t >= _MIN_GRID_STEPS (also feeds both v7x TCs at batch 1).
        size_cap = max(128, (_TARGET_STEP_BYTES // per_col) // 128 * 128)
        want_nt = max(2, _cdiv(_MIN_GRID_STEPS, B))
        size_cap = min(size_cap, max(128, _round_up(_cdiv(T, want_nt), 128)))
    tile = min(budget_cap, size_cap)
    if tile >= T:
        return T                                    # single full-extent block
    return tile


def film_kernel(x_ref, c_ref, w_ref, b_ref, o_ref, *, channels, padded_channels):
    # x_ref: (C, tT)  c_ref: (Cc, tT)  w_ref: (2*Cp, Cc)  b_ref: (2*Cp, 1)  o_ref: (C, tT)
    c = c_ref[...].astype(jnp.float32)
    w = w_ref[...].astype(jnp.float32)
    # One MXU pass computes mu (rows [0, Cp)) and sigma (rows [Cp, 2*Cp)).
    # Cp is a multiple of 8, so both row slices start on sublane-tile
    # boundaries — no relayout copies for arbitrary channel counts.
    ms = jnp.dot(w, c, preferred_element_type=jnp.float32) + b_ref[...].astype(jnp.float32)
    mu = ms[:channels, :]
    sigma = ms[padded_channels:padded_channels + channels, :]
    x = x_ref[...].astype(jnp.float32)
    o_ref[...] = (x * mu + sigma).astype(o_ref.dtype)


def _as_2d_weight(w):
    w = jnp.asarray(w)
    if w.ndim == 3:                # raw PyTorch Conv1d weight (C, Cc, 1)
        w = w.reshape(w.shape[0], w.shape[1])
    return w


def fuse_film_params(w_mu, b_mu, w_sigma, b_sigma):
    """Fuse the two 1x1 convs into one (2*Cp, Cc) weight / (2*Cp, 1) bias with
    each conv's output channels zero-padded to a multiple of 8.  Call ONCE at
    parameter-init time (outside the per-step decode loop)."""
    w_mu = _as_2d_weight(w_mu)
    w_sigma = _as_2d_weight(w_sigma)
    C, Cc = w_mu.shape
    Cp = _round_up(C, 8)
    pad = Cp - C

    def pad_rows(a):
        return jnp.pad(a, ((0, pad), (0, 0))) if pad else a

    w = jnp.concatenate([pad_rows(w_mu), pad_rows(w_sigma)], axis=0)
    b = jnp.concatenate(
        [pad_rows(jnp.asarray(b_mu).reshape(C, 1)),
         pad_rows(jnp.asarray(b_sigma).reshape(C, 1))], axis=0)
    return w, b


def film_fused(x, c, w, b, *, tile_t=None):
    """x: (B, C, T), c: (B, Cc, T), (w, b) from fuse_film_params() -> (B, C, T)."""
    B, C, T = x.shape
    Cc = c.shape[1]
    Cp = w.shape[0] // 2
    assert Cp >= C and Cp % 8 == 0 and w.shape[1] == Cc, "bad fused params"

    io_itemsize = max(jnp.dtype(x.dtype).itemsize, jnp.dtype(c.dtype).itemsize)
    vmem_budget, vmem_cap = _vmem_policy()
    if tile_t is None:
        tile_t = _choose_tile_t(B, T, C, Cc, io_itemsize, vmem_budget)
    n_t = _cdiv(T, tile_t)

    # Explicit scoped-VMEM limit with headroom: double-buffered x/c/out blocks
    # plus the resident fused params and compiler internal scratch slack.
    per_step = (2 * C + Cc) * tile_t * io_itemsize
    param_bytes = (2 * Cp) * (Cc + 1) * jnp.dtype(w.dtype).itemsize
    vmem_limit = int(min(vmem_cap, max(8 << 20, 4 * per_step + 4 * param_bytes)))

    grid_spec = pltpu.PrefetchScalarGridSpec(
        num_scalar_prefetch=0,
        grid=(B, n_t),
        in_specs=[
            pl.BlockSpec((None, C, tile_t), lambda bi, ti: (bi, 0, ti)),    # x
            pl.BlockSpec((None, Cc, tile_t), lambda bi, ti: (bi, 0, ti)),   # c
            pl.BlockSpec((2 * Cp, Cc), lambda bi, ti: (0, 0)),              # fused W (resident)
            pl.BlockSpec((2 * Cp, 1), lambda bi, ti: (0, 0)),               # fused bias (resident)
        ],
        out_specs=pl.BlockSpec((None, C, tile_t), lambda bi, ti: (bi, 0, ti)),
    )

    # Memory-bound hint for XLA's scheduler around the custom call.
    bytes_accessed = (B * T * (C + Cc) * io_itemsize
                      + B * T * C * jnp.dtype(x.dtype).itemsize
                      + param_bytes)
    cost = pl.CostEstimate(flops=2 * B * T * (2 * Cp) * Cc + 2 * B * T * C,
                           transcendentals=0,
                           bytes_accessed=bytes_accessed)

    # TODO(synk): if xprof shows exposed DMA waits on v7x after the 64 MiB
    # budget shrink, bump the x/c/out specs to pipeline_mode=pl.Buffered(3).
    return pl.pallas_call(
        functools.partial(film_kernel, channels=C, padded_channels=Cp),
        out_shape=jax.ShapeDtypeStruct((B, C, T), x.dtype),
        grid_spec=grid_spec,
        compiler_params=pltpu.CompilerParams(
            dimension_semantics=("parallel", "parallel"),
            vmem_limit_bytes=vmem_limit,
        ),
        cost_estimate=cost,
    )(x, c, w, b)


def film(x, c, w_mu, b_mu, w_sigma, b_sigma, *, tile_t=None):
    """Convenience wrapper.  In a decode loop, prefer calling
    fuse_film_params() once and film_fused() per step, so the parameter
    concatenation is not re-materialized on every call."""
    w, b = fuse_film_params(w_mu, b_mu, w_sigma, b_sigma)
    return film_fused(x, c, w, b, tile_t=tile_t)


def film_ref(x, c, w_mu, b_mu, w_sigma, b_sigma):
    # Pure-JAX reference matching PyTorch Conv1d(kernel_size=1) semantics.
    mu = jnp.einsum("oc,bct->bot", w_mu, c) + b_mu[None, :, None]
    sigma = jnp.einsum("oc,bct->bot", w_sigma, c) + b_sigma[None, :, None]
    return x * mu + sigma


if __name__ == "__main__":
    key = jax.random.PRNGKey(0)

    def make_case(k, B, C, Cc, T):
        kx, kc, k1, k2, k3, k4 = jax.random.split(k, 6)
        x = jax.random.normal(kx, (B, C, T), dtype=jnp.float32)
        c = jax.random.normal(kc, (B, Cc, T), dtype=jnp.float32)
        w_mu = jax.random.normal(k1, (C, Cc), dtype=jnp.float32) * 0.1
        b_mu = jax.random.normal(k2, (C,), dtype=jnp.float32) * 0.1
        w_sigma = jax.random.normal(k3, (C, Cc), dtype=jnp.float32) * 0.1
        b_sigma = jax.random.normal(k4, (C,), dtype=jnp.float32) * 0.1
        return x, c, w_mu, b_mu, w_sigma, b_sigma

    ka, kb = jax.random.split(key)

    # 1) f32, even shapes, auto tile -> grid (2, 4); exact vs reference.
    x, c, w_mu, b_mu, w_sigma, b_sigma = make_case(ka, B=2, C=8, Cc=16, T=512)
    w, b = fuse_film_params(w_mu, b_mu, w_sigma, b_sigma)        # hoisted fusion
    out = jax.block_until_ready(film_fused(x, c, w, b))
    ref = film_ref(x, c, w_mu, b_mu, w_sigma, b_sigma)
    assert out.shape == ref.shape
    assert jnp.allclose(out, ref, atol=1e-5, rtol=1e-5), "mismatch (f32 auto tile)"

    # 2) Ragged T (not a multiple of the 128-lane tile) and odd channel count
    #    (exercises the cdiv grid with a masked last block and the
    #    sublane-padded mu/sigma split).
    x2, c2, w_mu2, b_mu2, w_sigma2, b_sigma2 = make_case(kb, B=1, C=6, Cc=16, T=704)
    out2 = jax.block_until_ready(film(x2, c2, w_mu2, b_mu2, w_sigma2, b_sigma2))
    ref2 = film_ref(x2, c2, w_mu2, b_mu2, w_sigma2, b_sigma2)
    assert jnp.allclose(out2, ref2, atol=1e-5, rtol=1e-5), "mismatch (ragged T / odd C)"

    # 3) bf16 I/O for the HBM-bound tensors (kernel still upcasts to f32 and
    #    accumulates the MXU matmul in f32); looser tolerance vs f32 reference.
    xb = x.astype(jnp.bfloat16)
    cb = c.astype(jnp.bfloat16)
    outb = jax.block_until_ready(film_fused(xb, cb, w, b))
    assert outb.dtype == jnp.bfloat16
    assert jnp.allclose(outb.astype(jnp.float32), ref, atol=5e-2, rtol=5e-2), \
        "mismatch (bf16 I/O)"

    print("KERNEL_OK")
</pallas_src>

<mosaic_0001>
module attributes {stable_mosaic.version = 11 : i64} {
  func.func @film_kernel(%arg0: i32, %arg1: i32, %arg2: memref<1x8x128xf32, #tpu.memory_space<vmem>>, %arg3: memref<1x16x128xf32, #tpu.memory_space<vmem>>, %arg4: memref<16x16xf32, #tpu.memory_space<vmem>>, %arg5: memref<16x1xf32, #tpu.memory_space<vmem>>, %arg6: memref<1x8x128xf32, #tpu.memory_space<vmem>>) attributes {dimension_semantics = [#tpu.dimension_semantics<parallel>, #tpu.dimension_semantics<parallel>], iteration_bounds = array<i64: 2, 4>, scalar_prefetch = 0 : i64, scratch_operands = 0 : i64, tpu.core_type = #tpu.core_type<tc>, window_params = [{transform_indices = @transform_0, window_bounds = array<i64: 1, 8, 128>}, {transform_indices = @transform_1, window_bounds = array<i64: 1, 16, 128>}, {pipeline_mode = #tpu.pipeline_mode<synchronous>, transform_indices = @transform_2, window_bounds = array<i64: 16, 16>}, {pipeline_mode = #tpu.pipeline_mode<synchronous>, transform_indices = @transform_3, window_bounds = array<i64: 16, 1>}, {transform_indices = @transform_4, window_bounds = array<i64: 1, 8, 128>}]} {
    %c0 = arith.constant 0 : index
    %c0_0 = arith.constant 0 : index
    %c0_1 = arith.constant 0 : index
    %0 = vector.load %arg3[%c0, %c0_0, %c0_1] : memref<1x16x128xf32, #tpu.memory_space<vmem>>, vector<1x16x128xf32>
    %1 = vector.shape_cast %0 : vector<1x16x128xf32> to vector<16x128xf32>
    %c0_2 = arith.constant 0 : index
    %c0_3 = arith.constant 0 : index
    %2 = vector.load %arg4[%c0_2, %c0_3] : memref<16x16xf32, #tpu.memory_space<vmem>>, vector<16x16xf32>
    %cst = arith.constant dense<0.000000e+00> : vector<16x128xf32>
    %3 = tpu.matmul %2, %1, %cst {dimension_numbers = #tpu.dot_dimension_numbers<[1], [0], [0], [1], [0, 0, 1, 1], [], []>} : vector<16x16xf32>, vector<16x128xf32>, vector<16x128xf32> -> vector<16x128xf32>
    %c0_4 = arith.constant 0 : index
    %c0_5 = arith.constant 0 : index
    %4 = vector.load %arg5[%c0_4, %c0_5] : memref<16x1xf32, #tpu.memory_space<vmem>>, vector<16x1xf32>
    %5 = vector.broadcast %4 : vector<16x1xf32> to vector<16x128xf32>
    %6 = arith.addf %3, %5 : vector<16x128xf32>
    %7 = vector.extract_strided_slice %6 {offsets = [0, 0], sizes = [8, 128], strides = [1, 1]} : vector<16x128xf32> to vector<8x128xf32>
    %8 = vector.extract_strided_slice %6 {offsets = [8, 0], sizes = [8, 128], strides = [1, 1]} : vector<16x128xf32> to vector<8x128xf32>
    %c0_6 = arith.constant 0 : index
    %c0_7 = arith.constant 0 : index
    %c0_8 = arith.constant 0 : index
    %9 = vector.load %arg2[%c0_6, %c0_7, %c0_8] : memref<1x8x128xf32, #tpu.memory_space<vmem>>, vector<1x8x128xf32>
    %10 = vector.shape_cast %9 : vector<1x8x128xf32> to vector<8x128xf32>
    %11 = arith.mulf %10, %7 : vector<8x128xf32>
    %12 = arith.addf %11, %8 : vector<8x128xf32>
    %c0_9 = arith.constant 0 : index
    %c0_10 = arith.constant 0 : index
    %c0_11 = arith.constant 0 : index
    %13 = vector.load %arg6[%c0_9, %c0_10, %c0_11] : memref<1x8x128xf32, #tpu.memory_space<vmem>>, vector<1x8x128xf32>
    %14 = vector.shape_cast %13 : vector<1x8x128xf32> to vector<8x128xf32>
    %15 = vector.shape_cast %12 : vector<8x128xf32> to vector<1x8x128xf32>
    tpu.vector_store %arg6[%c0_9, %c0_10, %c0_11], %15 {strides = array<i32>} : memref<1x8x128xf32, #tpu.memory_space<vmem>>, vector<1x8x128xf32>,
    return
  }
  func.func @transform_0(%arg0: i32, %arg1: i32) -> (i32, i32, i32) {
    %c0_i32 = arith.constant 0 : i32
    %c0_i32_0 = arith.constant 0 : i32
    return %arg0, %c0_i32, %arg1 : i32, i32, i32
  }
  func.func @transform_1(%arg0: i32, %arg1: i32) -> (i32, i32, i32) {
    %c0_i32 = arith.constant 0 : i32
    %c0_i32_0 = arith.constant 0 : i32
    return %arg0, %c0_i32, %arg1 : i32, i32, i32
  }
  func.func @transform_2(%arg0: i32, %arg1: i32) -> (i32, i32) {
    %c0_i32 = arith.constant 0 : i32
    %c0_i32_0 = arith.constant 0 : i32
    %c0_i32_1 = arith.constant 0 : i32
    return %c0_i32, %c0_i32_0 : i32, i32
  }
  func.func @transform_3(%arg0: i32, %arg1: i32) -> (i32, i32) {
    %c0_i32 = arith.constant 0 : i32
    %c0_i32_0 = arith.constant 0 : i32
    %c0_i32_1 = arith.constant 0 : i32
    return %c0_i32, %c0_i32_0 : i32, i32
  }
  func.func @transform_4(%arg0: i32, %arg1: i32) -> (i32, i32, i32) {
    %c0_i32 = arith.constant 0 : i32
    %c0_i32_0 = arith.constant 0 : i32
    return %arg0, %c0_i32, %arg1 : i32, i32, i32
  }
}

</mosaic_0001>

<bundles_post_ra>
// kernel: tpu_custom_call.1
= control target key start
LH: loop header
LB: loop body
LE: loop exit
PB: predicated region body
PF: predicated region fallthrough
CT: control target
= control target key end

     0   :  { %s1014_s0 = inlined_call_operand.hbm [shape: f32[2,8,512], index: 0, kind: input, shape index: {}]   ;;  %s1015_s1 = inlined_call_operand.hbm [shape: f32[2,16,512], index: 1, kind: input, shape index: {}]   ;;  %s1016_s2 = inlined_call_operand.vmem [shape: f32[16,16], index: 2, kind: input, shape index: {}]   ;;  %s1017_s3 = inlined_call_operand.vmem [shape: f32[16,1], index: 3, kind: input, shape index: {}]   ;;  %s1018_s4 = inlined_call_operand.hbm [shape: f32[2,8,512], index: 4, kind: output, shape index: {}]  }
   0x1   :  { %1022 = sst [smem:[#allocation15_spill]] %s1014_s0 }
   0x2   :  { %9 = vsyncpa [#allocation3], 0 }
   0x3   :  { %11 = vsyncpa [#allocation3 + $0x1], 0 }
   0x4   :  { %12 = vsyncpa [#allocation6], 0 }
   0x5   :  { %14 = vsyncpa [#allocation6 + $0x1], 0 }
   0x6   :  { %15 = vsyncpa [#allocation4], 0 }
   0x7   :  { %17 = vsyncpa [#allocation4 + $0x1], 0  ;;  %s812_s15 = smov 0   ;;  %s814_s16 = smov 0  }
   0x8   :  { %s816_s17 = smov 0   ;;  %s818_s18 = smov 0  }
   0x9   :  { %s820_s19 = smov 0   ;;  %s822_s20 = smov 0  }
   0xa   :  { %s824_s21 = smov 0   ;;  %s826_s22 = smov 0  }
   0xb LB: > { %1023 = sst [smem:[#allocation11_spill]] %s758_s17  ;;  %s502_s23 = sadd.s32 4294967295, %s778_s22   ;;  %s778_s22 = sphi %s826_s22, %s23_s22   ;;  %s774_s21 = sphi %s824_s21, %s1043_s21   ;;  %s770_s20 = sphi %s822_s20, %s1042_s20   ;;  %s766_s19 = sphi %s820_s19, %s1041_s19   ;;  %s762_s18 = sphi %s818_s18, %s1040_s18   ;;  %s758_s17 = sphi %s816_s17, %s1035_s17   ;;  %s754_s16 = sphi %s814_s16, %s1039_s16   ;;  %s750_s15 = sphi %s812_s15, %s1038_s15  }
   0xc   : > { %s503_s24 = sadd.s32 4294967294, %s778_s22   ;;  %s32_s25 = sadd.s32 1, %s770_s20 }
   0xd   : > { %s35_s26 = sadd.s32 1, %s774_s21  ;;  %p33_p0 = scmp.ge.s32.totalorder %s32_s25, 4 }
   0xe   : > { %s44_s27 = sadd.s32 1, %s758_s17  ;;  %p51_p1 = scmp.ne.s32.totalorder %s758_s17, %s754_s16 }
   0xf   : > { %p52_p2 = scmp.eq.s32.totalorder %s778_s22, 0  ;;  %s1045_s25 = smov (%p33_p0, %s32_s25), 0 }
  0x10   : > { %1024 = sst [smem:[#allocation12_spill]] %s1045_s25  ;;  %s1047_s26 = smov (!%p33_p0, %s35_s26), %s774_s21 }
  0x11   : > { %s40_s28 = ssub.s32 %s770_s20, %s1045_s25  ;;  %p865_p3 = por %p52_p2, %p51_p1 }
  0x12   : > { %p37_p4 = scmp.ge.s32.totalorder %s1047_s26, 2  ;;  %p57_p5 = scmp.ne.s32.totalorder %s754_s16, %s750_s15 }
  0x13   : > { %p58_p6 = scmp.eq.s32.totalorder %s502_s23, 0  ;;  %p153_p7 = scmp.eq.s32.totalorder %s502_s23, 7 }
  0x14   : > { %s1049_s26 = smov (%p37_p4, %s1047_s26), 0  ;;  %p159_p10 = scmp.eq.s32.totalorder %s503_s24, 7 }
  0x15   : > { %1026 = sst [smem:[#allocation13_spill]] %s1049_s26  ;;  %p873_p8 = por %p58_p6, %p57_p5 }
  0x16   : > { %p877_p9 = por %p153_p7, %p51_p1  ;;  %s39_s6 = ssub.s32 %s774_s21, %s1049_s26 }
  0x17   : > { %s41_s7 = sor.u32 %s40_s28, %s39_s6  ;;  %p883_p12 = por %p159_p10, %p57_p5 }
  0x18   : > { %p42_p11 = scmp.eq.s32.totalorder %s41_s7, 0  ;;  %p551_p13 = scmp.lt.s32.totalorder %s778_s22, 8 }
  0x19   : > { %s889_s9 = sand.u32 1, %s758_s17   ;;  %s507_s12 = sshll.u32 %s774_s21, 2 }
  0x1a   : > { %s892_s10 = scalar_select %p42_p11, %s758_s17, %s44_s27  }
  0x1b   : > { %s506_s11 = sshll.u32 %s889_s9, 3  ;;  %s194_s13 = sadd.s32 %s770_s20, %s507_s12 }
  0x1c   : > { %1030 = sst [smem:[#allocation14_spill]] %s892_s10  ;;  %s189_s14 = scalar_lea.vmem [#allocation2], %s506_s11 }
  0x1d   : > { %s198_s23 = sshll.u32 %s189_s14, 4  ;;  %s508_s24 = sshll.u32 %s194_s13, 7  ;;  %s199_s23 = int_to_ptr.vmem [resolvable:$true] %s198_s23 }
  0x1e   : > { %s1031_s0 = sld [smem:[#allocation15_spill]]  ;;  %p902_p0 = pnand %p551_p13, %p865_p3 }
  0x1f   : > { %s509_s27 = sshll.u32 %s889_s9, 4  ;;  %s186_s25 = scalar_lea.sflag [#allocation3], %s889_s9 }
  0x20   : > { %p624_p1 = pneg %p902_p0  ;;  %s635_s12 = scalar_lea.vmem %s199_s23, 128 }
  0x21   : > { %p636_p2 = scmp.ne.s32.totalorder %s199_s23, %s635_s12  ;;  %s780_s11 = smov [#allocation2]  }
  0x22   : > { %s640_s13 = sshll.u32 %s780_s11, 4  ;;  %s641_s13 = int_to_ptr.vmem [resolvable:$false] %s640_s13 }
  0x23   : > { %p638_p4 = pnand %p636_p2, %p624_p1  ;;  %s642_s29 = scalar_lea.vmem %s641_s13, 256 }
  0x24   : > { %s196_s7 = scalar_lea.hbm %s1031_s0, %s508_s24  ;;  %p643_p3 = scmp.lt.s32.totalorder %s199_s23, %s641_s13 }
  0x25   : > { %p639_p5 = pneg %p638_p4  ;;  %p644_p6 = scmp.lt.s32.totalorder %s642_s29, %s635_s12 }
  0x27   : > { %p645_p7 = por %p644_p6, %p643_p3 }
  0x29   : > { %p646_p10 = pnand %p645_p7, %p639_p5 }
  0x2b   : > { %649 = shalt.err (!%p646_p10)
}
  0x2c   : > { %543 = dma.hbm_to_vmem [thread:$0]  (!%p902_p0), %s196_s7, 128, %s199_s23, %s186_s25  }
  0x2d   : > { %s510_s14 = sshll.u32 %s774_s21, 3  ;;  %p512_p11 = scmp.ge.s32.totalorder %s778_s22, 1 }
  0x2e   : > { %s214_s24 = sadd.s32 %s770_s20, %s510_s14  ;;  %p225_p13 = scmp.lt.s32.totalorder %s778_s22, 9 }
  0x2f   : > { %s511_s28 = sshll.u32 %s214_s24, 7  ;;  %s209_s6 = scalar_lea.vmem [#allocation5], %s509_s27 }
  0x30   : > { %s217_s11 = sshll.u32 %s209_s6, 4  ;;  %p919_p2 = pnand %p512_p11, %p225_p13  ;;  %s218_s11 = int_to_ptr.vmem [resolvable:$true] %s217_s11 }
  0x31   : > { %s216_s0 = scalar_lea.hbm %s1015_s1, %s511_s28  ;;  %s206_s10 = scalar_lea.sflag [#allocation6], %s889_s9 }
  0x32   : > { %s663_s17 = scalar_lea.vmem %s218_s11, 256  ;;  %s781_s25 = smov [#allocation5]  }
  0x33   : > { %p664_p4 = scmp.ne.s32.totalorder %s218_s11, %s663_s17  ;;  %s668_s23 = sshll.u32 %s781_s25, 4  ;;  %s669_s23 = int_to_ptr.vmem [resolvable:$false] %s668_s23 }
  0x34   : > { %s670_s7 = scalar_lea.vmem %s669_s23, 512  ;;  %p671_p6 = scmp.lt.s32.totalorder %s218_s11, %s669_s23 }
  0x35   : > { %p666_p5 = pnand %p664_p4, %p624_p1  ;;  %p672_p7 = scmp.lt.s32.totalorder %s670_s7, %s663_s17 }
  0x37   : > { %p667_p3 = pneg %p666_p5  ;;  %p673_p10 = por %p672_p7, %p671_p6 }
  0x39   : > { %p674_p11 = pnand %p673_p10, %p667_p3 }
  0x3b   : > { %677 = shalt.err (!%p674_p11)
}
  0x3c   : > { %s782_s27 = smov 512   ;;  %s783_s14 = smov 128  }
  0x3d   : > { %s784_s24 = smov 8   ;;  %229 = sbr.rel (%p919_p2) target bundleno = 289 (0x121), region = 36 }
  0x3e   : > { %546 = dma.hbm_to_vmem [thread:$0]  (!%p902_p0), %s216_s0, 256, %s218_s11, %s206_s10, %s782_s27, %s783_s14, %s784_s24  }
  0x3f   : > { %s935_s9 = sand.u32 (!%p919_p2), 1, %s754_s16  }
  0x40   : > { %s513_s17 = sshll.u32 (!%p919_p2), %s935_s9, 3  ;;  %s232_s28 = scalar_lea.sflag (!%p919_p2), [#allocation3], %s935_s9 }
  0x41   : > { %s941_s6 = scalar_lea.vmem (!%p919_p2), [#allocation2], %s513_s17 }
  0x42   : > { %737 = dma.done.wait (%p873_p8), %s232_s28, 128  }
  0x43   : > { %739 = vsyncadd (%p873_p8), %s232_s28, 4294967168  ;;  %s514_s0 = sshll.u32 %s935_s9, 4  ;;  %s241_s26 = scalar_lea.sflag [#allocation6], %s935_s9 }
  0x44   : > { %s244_s10 = scalar_lea.vmem [#allocation5], %s514_s0 }
  0x45   : > { %741 = dma.done.wait (%p873_p8), %s241_s26, 256  }
  0x46   : > { %743 = vsyncadd (%p873_p8), %s241_s26, 4294967040  ;;  %v785_v0 = vmov 0   ;;  %vm290_vm0 = vcmask 130048   ;;  %v275_v1 = vld [vmem:[%s244_s10 + $0x8] sm:$0xff]  ;;  %v274_v2 = vld [vmem:[%s244_s10] sm:$0xff]  ;;  %s519_s27 = sshll.u32 %s766_s19, 2 }
  0x47   : > { %621 = vset.pattern.permute.xlu0 %v785_v0  ;;  %v276_v3 = vld [vmem:[%s1016_s2] sm:$0xff]  ;;  %527 = vmatprep.subr.mxu0 %v275_v1  ;;  %v277_v5 = vld [vmem:[%s1016_s2 + $0x8] sm:$0xff]  ;;  %s388_s14 = sadd.s32 %s762_s18, %s519_s27  ;;  %s273_s28 = scalar_lea.vmem [#allocation7], %s513_s17 }
  0x48   : > { %531 = vmatprep.mubr.msk.f32.mxu0 %vm290_vm0, %v276_v3  ;;  %v278_v4 = vld [vmem:[%s1017_s3] sm:$0xff]  ;;  %528 = vmatpush3.msra.mxu0 %v275_v1  ;;  %v279_v6 = vld [vmem:[%s1017_s3 + $0x8] sm:$0xff]  ;;  %s520_s24 = sshll.u32 %s388_s14, 7  ;;  %s392_s0 = sshll.u32 %s273_s28, 4  ;;  %s393_s0 = int_to_ptr.vmem [resolvable:$true] %s392_s0 }
  0x49   : > { %282 = vperm.xlu0 %621, %v278_v4   ;;  %529 = vmatprep.subr.mxu0 %v274_v2  ;;  %v372_v11 = vld [vmem:[%s941_s6] sm:$0xff]  ;;  %s390_s11 = scalar_lea.hbm %s1018_s4, %s520_s24  ;;  %s377_s19 = scalar_lea.sflag [#allocation4], %s935_s9 }
  0x4a   : > { %530 = vmatpush3.msra.mxu0 %v274_v2  ;;  %s678_s18 = scalar_lea.vmem %s393_s0, 128  ;;  %s786_s6 = smov [#allocation7]  }
  0x4b   : > { %532 = vmatmul.mubr.msk.f32.vlgmr.msra.gmra.mxu0 %vm290_vm0, %v277_v5  ;;  %p679_p8 = scmp.ne.s32.totalorder %s393_s0, %s678_s18  ;;  %s682_s12 = sshll.u32 %s786_s6, 4  ;;  %s683_s12 = int_to_ptr.vmem [resolvable:$false] %s682_s12 }
  0x4c   : > { %s684_s17 = scalar_lea.vmem %s683_s12, 256  ;;  %p685_p13 = scmp.lt.s32.totalorder %s393_s0, %s683_s12 }
  0x4d   : > { %287 = vperm.xlu0 %621, %v279_v6   ;;  %p680_p0 = pnand %p679_p8, %p877_p9  ;;  %p686_p2 = scmp.lt.s32.totalorder %s684_s17, %s678_s18 }
  0x4f   : > { %p681_p1 = pneg %p680_p0  ;;  %p687_p4 = por %p686_p2, %p685_p13 }
  0x51   : > { %p688_p5 = pnand %p687_p4, %p681_p1 }
  0xc4   : > { %v283_v7 = vpop.permute.xlu0 %282 }
  0xc8   : > { %v288_v9 = vpop.permute.xlu0 %287 }
 0x10b   : > { %v533_v8 = vpop.f32.mrf.mxu0 }
 0x10c   : > { %v369_v13 = vadd.f32 %v533_v8, %v288_v9 }
 0x10d   : > { %v363_v10 = vpop.f32.mrf.mxu0 }
 0x10e   : > { %v364_v12 = vadd.f32 %v363_v10, %v283_v7 }
 0x110   : > { %v373_v14 = vmul.f32 %v372_v11, %v364_v12 }
 0x112   : > { %v374_v15 = vadd.f32 %v373_v14, %v369_v13 }
 0x114   : > { %375 = vst [vmem:[%s273_s28] sm:$0xff] %v374_v15 }
 0x115   : > { %691 = shalt.err (!%p688_p5)
}
 0x116   : > { %s692_s13 = scalar_lea.hbm %s390_s11, 128  ;;  %s696_s30 = scalar_lea.hbm %s1018_s4, 1024 }
 0x117   : > { %p693_p3 = scmp.ne.s32.totalorder %s390_s11, %s692_s13  ;;  %p697_p10 = scmp.lt.s32.totalorder %s390_s11, %s1018_s4 }
 0x118   : > { %p698_p11 = scmp.lt.s32.totalorder %s696_s30, %s692_s13 }
 0x119   : > { %p694_p6 = pnand %p693_p3, %p877_p9 }
 0x11a   : > { %p699_p8 = por %p698_p11, %p697_p10 }
 0x11b   : > { %p695_p7 = pneg %p694_p6 }
 0x11d   : > { %p700_p0 = pnand %p699_p8, %p695_p7 }
 0x11f   : > { %703 = shalt.err (!%p700_p0)
}
 0x120   : > { %538 = dma.vmem_to_hbm [thread:$0]  (%p877_p9), %s393_s0, 128, %s390_s11, %s377_s19  }
 0x121 PF: > { %p552_p1 = scmp.ge.s32.totalorder %s778_s22, 2  ;;  %s404_s7 = sand.u32 1, %s750_s15  }
 0x122   : > { %s405_s27 = scalar_lea.sflag [#allocation4], %s404_s7 }
 0x123   : > { %p548_p13 = pnand %p552_p1, %p883_p12 }
 0x125   : > { %p549_p2 = pneg %p548_p13 }
 0x127   : > { %745 = dma.done.wait (%p549_p2), %s405_s27, 128  }
 0x128   : > { %747 = vsyncadd (%p549_p2), %s405_s27, 4294967168  ;;  %s23_s22 = sadd.s32 1, %s778_s22   ;;  %s1034_s14 = sld [smem:[#allocation11_spill]] }
 0x129   : > { %p20_p4 = scmp.ge.s32.totalorder %s23_s22, 10   ;;  %s1035_s17 = sld [smem:[#allocation14_spill]] }
 0x12a   : > { %s1036_s5 = sld [smem:[#allocation12_spill]]  ;;  %s1038_s15 = smov %s754_s16 }
 0x12b   : > { %s1037_s24 = sld [smem:[#allocation13_spill]]  ;;  %s1040_s18 = smov %s770_s20 }
 0x12c   : > { %s1041_s19 = smov %s774_s21 }
 0x12d   :  { %22 = sbr.rel (!%p20_p4) target bundleno = 11 (0xb), region = 94 }
 0x12e   : > { %s1039_s16 = smov %s1034_s14 }
 0x130   : > { %s1042_s20 = smov %s1036_s5 }
 0x131   : > { %s1043_s21 = smov %s1037_s24 }
 0x132   :  { %410 = vsyncpa [#allocation3], 1 }
 0x133   :  { %412 = vsyncpa [#allocation3 + $0x1], 1 }
 0x134   :  { %413 = vsyncpa [#allocation6], 1 }
 0x135   :  { %415 = vsyncpa [#allocation6 + $0x1], 1 }
 0x136   :  { %416 = vsyncpa [#allocation4], 1 }
 0x137   :  { %418 = vsyncpa [#allocation4 + $0x1], 1 }

</bundles_post_ra>
